<compile_context>
chip_gen: v7x
topology: tpu7x:2x2x1
jax: 0.10.0
libtpu: 0.0.40
codegen_flags: <defaults>
</compile_context>

<pallas_src>
import functools
import math

import jax
import jax.numpy as jnp
from jax import lax
from jax.experimental import pallas as pl
from jax.experimental.pallas import tpu as pltpu

BN_EPS = 1e-5
OUT_LANES = 128          # lane-dense width of the second layer / output tile


def _unimodal_kernel(t_ref, i_ref, pa_ref, pb_ref, o_ref, *,
                     n_valid, n_rows, d, d2):
    """Fused text+image unimodal MLP (train-mode BN, linear biases folded away).

    t_ref  : (n_rows, d)        text activations   (rows >= n_valid are pad)
    i_ref  : (n_rows, d)        image activations
    pa_ref : (d2 + 8, d2)       rows 0:d   -> W1t  (live in cols 0:d)
                                rows d:d2  -> W1i  (live in cols d:d2)
                                row  d2    -> gamma1 ; row d2+1 -> beta1
    pb_ref : (d2 + 8, 128)      rows 0:d   -> W2t  (cols 0:p)
                                rows d:d2  -> W2i  (cols p:2p), rest zero
                                row  d2    -> gamma2 ; row d2+1 -> beta2
    o_ref  : (n_rows, 128)      [text_prime | image_prime | zeros]
    """
    w1_t = pa_ref[pl.ds(0, d), :]              # (d, d2)
    w1_i = pa_ref[pl.ds(d, d), :]              # (d, d2)
    g1 = pa_ref[pl.ds(d2, 1), :]               # (1, d2)
    be1 = pa_ref[pl.ds(d2 + 1, 1), :]          # (1, d2)
    w2 = pb_ref[pl.ds(0, d2), :]               # (d2, 128)
    g2 = pb_ref[pl.ds(d2, 1), :]               # (1, 128)
    be2 = pb_ref[pl.ds(d2 + 1, 1), :]          # (1, 128)

    if n_valid != n_rows:   # trace-time constant: mask only when batch is padded
        mask = (lax.broadcasted_iota(jnp.int32, (n_rows, 1), 0) < n_valid).astype(
            jnp.float32)
    else:
        mask = None
    inv_n = jnp.float32(1.0 / n_valid)

    def bn_relu(a, gamma, beta):
        # BatchNorm1d (train-mode, biased variance) + ReLU; stats over valid rows.
        if mask is None:
            mean = jnp.sum(a, axis=0, keepdims=True) * inv_n
            cent = a - mean
            var = jnp.sum(cent * cent, axis=0, keepdims=True) * inv_n
        else:
            mean = jnp.sum(a * mask, axis=0, keepdims=True) * inv_n
            cent = a - mean
            var = jnp.sum(cent * cent * mask, axis=0, keepdims=True) * inv_n
        scale = lax.rsqrt(var + BN_EPS) * gamma        # EUP rsqrt, gamma folded
        return jnp.maximum(cent * scale + beta, 0.0)

    # Layer 1: block-diagonal [text | image] as two K=128 dots into one 256-lane tile.
    h = (jnp.dot(t_ref[...], w1_t, preferred_element_type=jnp.float32)
         + jnp.dot(i_ref[...], w1_i, preferred_element_type=jnp.float32))
    h = bn_relu(h, g1, be1)
    # Layer 2: lane-dense 128-wide output tile (only the first 2*p lanes are live).
    y = jnp.dot(h, w2, preferred_element_type=jnp.float32)
    o_ref[...] = bn_relu(y, g2, be2)


def pack_params(params):
    """Pack weights/BN params into two lane-dense slabs.

    Do this ONCE per parameter update — it is intentionally outside the
    per-call hot path.  Linear biases b1/b2 are not packed: they cancel
    exactly under train-mode BN mean subtraction.
    """
    f32 = jnp.float32
    d = params["w1t"].shape[0]
    p = params["w2t"].shape[1]
    d2 = 2 * d
    pa = jnp.zeros((d2 + 8, d2), f32)
    pa = pa.at[:d, :d].set(params["w1t"].astype(f32))
    pa = pa.at[d:d2, d:d2].set(params["w1i"].astype(f32))
    pa = pa.at[d2, :].set(jnp.concatenate([params["g1t"], params["g1i"]]).astype(f32))
    pa = pa.at[d2 + 1, :].set(
        jnp.concatenate([params["be1t"], params["be1i"]]).astype(f32))

    pb = jnp.zeros((d2 + 8, OUT_LANES), f32)
    pb = pb.at[:d, :p].set(params["w2t"].astype(f32))
    pb = pb.at[d:d2, p:2 * p].set(params["w2i"].astype(f32))
    pb = pb.at[d2, :2 * p].set(
        jnp.concatenate([params["g2t"], params["g2i"]]).astype(f32))
    pb = pb.at[d2 + 1, :2 * p].set(
        jnp.concatenate([params["be2t"], params["be2i"]]).astype(f32))
    return pa, pb


@functools.partial(jax.jit, static_argnames=("prime_dim",))
def unimodal_forward(text_encoding, image_encoding, pa, pb, *, prime_dim=16):
    """Returns (text_prime, image_prime), each (B, prime_dim)."""
    b, d = text_encoding.shape
    d2 = 2 * d
    bp = max(8, ((b + 7) // 8) * 8)                # pad batch to f32 sublane multiple

    t = text_encoding.astype(jnp.float32)
    im = image_encoding.astype(jnp.float32)
    if bp != b:
        t = jnp.pad(t, ((0, bp - b), (0, 0)))
        im = jnp.pad(im, ((0, bp - b), (0, 0)))

    kernel = functools.partial(_unimodal_kernel, n_valid=b, n_rows=bp, d=d, d2=d2)
    vmem = pl.BlockSpec(memory_space=pltpu.MemorySpace.VMEM)
    cost = pl.CostEstimate(
        flops=2 * bp * d2 * d2 + 2 * bp * d2 * OUT_LANES
              + 12 * bp * (d2 + OUT_LANES),
        transcendentals=d2 + OUT_LANES,
        bytes_accessed=4 * (2 * bp * d + pa.size + pb.size + bp * OUT_LANES),
    )
    out = pl.pallas_call(
        kernel,
        out_shape=jax.ShapeDtypeStruct((bp, OUT_LANES), jnp.float32),
        in_specs=[vmem, vmem, vmem, vmem],
        out_specs=vmem,
        cost_estimate=cost,
    )(t, im, pa, pb)
    # TODO(synk): at large B add a grid: on v7x split the fused feature/modality axis
    # across the 2 TensorCores (BN stats are per-feature, so no cross-core reduction);
    # re-derive the single-block batch ceiling per generation (v7x 64 MiB VMEM,
    # v5e 16 MiB default scoped) and set pltpu.CompilerParams(vmem_limit_bytes=...).
    return out[:b, :prime_dim], out[:b, prime_dim:2 * prime_dim]


def init_params(key, d=128, p=16):
    """Deterministic synthetic parameters (shapes from _UnimodalModule.__init__)."""
    ks = jax.random.split(key, 16)

    def lin(kw, kb, fi, fo):
        bound = 1.0 / math.sqrt(fi)
        w = jax.random.uniform(kw, (fi, fo), jnp.float32, -bound, bound)  # x @ W layout
        b = jax.random.uniform(kb, (fo,), jnp.float32, -bound, bound)
        return w, b

    def bn(kg, kb, n):
        g = jax.random.uniform(kg, (n,), jnp.float32, 0.5, 1.5)
        b = jax.random.uniform(kb, (n,), jnp.float32, -0.5, 0.5)
        return g, b

    w1t, b1t = lin(ks[0], ks[1], d, d)
    w2t, b2t = lin(ks[2], ks[3], d, p)
    w1i, b1i = lin(ks[4], ks[5], d, d)
    w2i, b2i = lin(ks[6], ks[7], d, p)
    g1t, be1t = bn(ks[8], ks[9], d)
    g2t, be2t = bn(ks[10], ks[11], p)
    g1i, be1i = bn(ks[12], ks[13], d)
    g2i, be2i = bn(ks[14], ks[15], p)
    return dict(
        w1t=w1t, b1t=b1t, g1t=g1t, be1t=be1t, w2t=w2t, b2t=b2t, g2t=g2t, be2t=be2t,
        w1i=w1i, b1i=b1i, g1i=g1i, be1i=be1i, w2i=w2i, b2i=b2i, g2i=g2i, be2i=be2i,
    )


def reference_forward(text, image, params):
    """Pure-JAX reference of _UnimodalModule.forward (train-mode BN, with biases)."""
    hp = lax.Precision.HIGHEST

    def bn_relu(a, g, be):
        m = jnp.mean(a, axis=0, keepdims=True)
        v = jnp.mean((a - m) ** 2, axis=0, keepdims=True)
        return jnp.maximum((a - m) / jnp.sqrt(v + BN_EPS) * g + be, 0.0)

    def branch(x, w1, b1, g1, be1, w2, b2, g2, be2):
        h = bn_relu(jnp.dot(x, w1, precision=hp) + b1, g1, be1)
        return bn_relu(jnp.dot(h, w2, precision=hp) + b2, g2, be2)

    t = branch(text, params["w1t"], params["b1t"], params["g1t"], params["be1t"],
               params["w2t"], params["b2t"], params["g2t"], params["be2t"])
    i = branch(image, params["w1i"], params["b1i"], params["g1i"], params["be1i"],
               params["w2i"], params["b2i"], params["g2i"], params["be2i"])
    return t, i


if __name__ == "__main__":
    key = jax.random.PRNGKey(0)
    k_par, k_txt, k_img = jax.random.split(key, 3)

    B, D, P = 6, 128, 16   # B=6 exercises the padded-batch masked-statistics path
    params = init_params(k_par, D, P)
    pa, pb = pack_params(params)          # packed once, outside the per-call path

    text_encoding = jax.random.normal(k_txt, (B, D), jnp.float32)
    image_encoding = jax.random.normal(k_img, (B, D), jnp.float32)

    text_prime, image_prime = unimodal_forward(
        text_encoding, image_encoding, pa, pb, prime_dim=P)
    text_prime, image_prime = jax.block_until_ready((text_prime, image_prime))

    ref_t, ref_i = reference_forward(text_encoding, image_encoding, params)

    assert text_prime.shape == (B, P) and image_prime.shape == (B, P)
    assert bool(jnp.all(jnp.isfinite(text_prime)))
    assert bool(jnp.all(jnp.isfinite(image_prime)))
    assert bool(jnp.allclose(text_prime, ref_t, atol=2e-3, rtol=2e-3))
    assert bool(jnp.allclose(image_prime, ref_i, atol=2e-3, rtol=2e-3))
    print("KERNEL_OK")
</pallas_src>

<mosaic_0001>
module attributes {stable_mosaic.version = 11 : i64} {
  func.func @_unimodal_kernel(%arg0: memref<8x128xf32, #tpu.memory_space<vmem>>, %arg1: memref<8x128xf32, #tpu.memory_space<vmem>>, %arg2: memref<264x256xf32, #tpu.memory_space<vmem>>, %arg3: memref<264x128xf32, #tpu.memory_space<vmem>>, %arg4: memref<8x128xf32, #tpu.memory_space<vmem>>) attributes {dimension_semantics = [], scalar_prefetch = 0 : i64, scratch_operands = 0 : i64, tpu.core_type = #tpu.core_type<tc>} {
    %c0 = arith.constant 0 : index
    %c0_0 = arith.constant 0 : index
    %0 = vector.load %arg2[%c0, %c0_0] : memref<264x256xf32, #tpu.memory_space<vmem>>, vector<128x256xf32>
    %c128 = arith.constant 128 : index
    %c0_1 = arith.constant 0 : index
    %1 = vector.load %arg2[%c128, %c0_1] : memref<264x256xf32, #tpu.memory_space<vmem>>, vector<128x256xf32>
    %c256 = arith.constant 256 : index
    %c0_2 = arith.constant 0 : index
    %2 = vector.load %arg2[%c256, %c0_2] : memref<264x256xf32, #tpu.memory_space<vmem>>, vector<1x256xf32>
    %c257 = arith.constant 257 : index
    %c0_3 = arith.constant 0 : index
    %3 = vector.load %arg2[%c257, %c0_3] : memref<264x256xf32, #tpu.memory_space<vmem>>, vector<1x256xf32>
    %c0_4 = arith.constant 0 : index
    %c0_5 = arith.constant 0 : index
    %4 = vector.load %arg3[%c0_4, %c0_5] : memref<264x128xf32, #tpu.memory_space<vmem>>, vector<256x128xf32>
    %c256_6 = arith.constant 256 : index
    %c0_7 = arith.constant 0 : index
    %5 = vector.load %arg3[%c256_6, %c0_7] : memref<264x128xf32, #tpu.memory_space<vmem>>, vector<1x128xf32>
    %c257_8 = arith.constant 257 : index
    %c0_9 = arith.constant 0 : index
    %6 = vector.load %arg3[%c257_8, %c0_9] : memref<264x128xf32, #tpu.memory_space<vmem>>, vector<1x128xf32>
    %7 = tpu.iota {dimensions = array<i32: 0>} : vector<8x1xi32>
    %c6_i32 = arith.constant 6 : i32
    %8 = vector.broadcast %c6_i32 : i32 to vector<8x1xi32>
    %9 = arith.cmpi slt, %7, %8 : vector<8x1xi32>
    %10 = arith.extui %9 : vector<8x1xi1> to vector<8x1xi32>
    %11 = arith.sitofp %10 : vector<8x1xi32> to vector<8x1xf32>
    %c0_10 = arith.constant 0 : index
    %c0_11 = arith.constant 0 : index
    %12 = vector.load %arg0[%c0_10, %c0_11] : memref<8x128xf32, #tpu.memory_space<vmem>>, vector<8x128xf32>
    %cst = arith.constant dense<0.000000e+00> : vector<8x256xf32>
    %13 = tpu.matmul %12, %0, %cst {dimension_numbers = #tpu.dot_dimension_numbers<[1], [0], [0], [1], [0, 0, 1, 1], [], []>} : vector<8x128xf32>, vector<128x256xf32>, vector<8x256xf32> -> vector<8x256xf32>
    %c0_12 = arith.constant 0 : index
    %c0_13 = arith.constant 0 : index
    %14 = vector.load %arg1[%c0_12, %c0_13] : memref<8x128xf32, #tpu.memory_space<vmem>>, vector<8x128xf32>
    %cst_14 = arith.constant dense<0.000000e+00> : vector<8x256xf32>
    %15 = tpu.matmul %14, %1, %cst_14 {dimension_numbers = #tpu.dot_dimension_numbers<[1], [0], [0], [1], [0, 0, 1, 1], [], []>} : vector<8x128xf32>, vector<128x256xf32>, vector<8x256xf32> -> vector<8x256xf32>
    %16 = arith.addf %13, %15 : vector<8x256xf32>
    %17 = vector.broadcast %11 : vector<8x1xf32> to vector<8x256xf32>
    %18 = arith.mulf %16, %17 : vector<8x256xf32>
    %cst_15 = arith.constant dense<0.000000e+00> : vector<256xf32>
    %19 = vector.multi_reduction <add>, %18, %cst_15 [0] : vector<8x256xf32> to vector<256xf32>
    %20 = vector.shape_cast %19 : vector<256xf32> to vector<1x256xf32>
    %cst_16 = arith.constant 0.166666672 : f32
    %21 = vector.broadcast %cst_16 : f32 to vector<1x256xf32>
    %22 = arith.mulf %20, %21 : vector<1x256xf32>
    %23 = vector.broadcast %22 : vector<1x256xf32> to vector<8x256xf32>
    %24 = arith.subf %16, %23 : vector<8x256xf32>
    %25 = arith.mulf %24, %24 : vector<8x256xf32>
    %26 = vector.broadcast %11 : vector<8x1xf32> to vector<8x256xf32>
    %27 = arith.mulf %25, %26 : vector<8x256xf32>
    %cst_17 = arith.constant dense<0.000000e+00> : vector<256xf32>
    %28 = vector.multi_reduction <add>, %27, %cst_17 [0] : vector<8x256xf32> to vector<256xf32>
    %29 = vector.shape_cast %28 : vector<256xf32> to vector<1x256xf32>
    %cst_18 = arith.constant 0.166666672 : f32
    %30 = vector.broadcast %cst_18 : f32 to vector<1x256xf32>
    %31 = arith.mulf %29, %30 : vector<1x256xf32>
    %cst_19 = arith.constant 9.99999974E-6 : f32
    %32 = vector.broadcast %cst_19 : f32 to vector<1x256xf32>
    %33 = arith.addf %31, %32 : vector<1x256xf32>
    %34 = math.rsqrt %33 : vector<1x256xf32>
    %35 = arith.mulf %34, %2 : vector<1x256xf32>
    %36 = vector.broadcast %35 : vector<1x256xf32> to vector<8x256xf32>
    %37 = arith.mulf %24, %36 : vector<8x256xf32>
    %38 = vector.broadcast %3 : vector<1x256xf32> to vector<8x256xf32>
    %39 = arith.addf %37, %38 : vector<8x256xf32>
    %cst_20 = arith.constant 0.000000e+00 : f32
    %40 = vector.broadcast %cst_20 : f32 to vector<8x256xf32>
    %41 = arith.maximumf %39, %40 : vector<8x256xf32>
    %cst_21 = arith.constant dense<0.000000e+00> : vector<8x128xf32>
    %42 = tpu.matmul %41, %4, %cst_21 {dimension_numbers = #tpu.dot_dimension_numbers<[1], [0], [0], [1], [0, 0, 1, 1], [], []>} : vector<8x256xf32>, vector<256x128xf32>, vector<8x128xf32> -> vector<8x128xf32>
    %43 = vector.broadcast %11 : vector<8x1xf32> to vector<8x128xf32>
    %44 = arith.mulf %42, %43 : vector<8x128xf32>
    %cst_22 = arith.constant dense<0.000000e+00> : vector<128xf32>
    %45 = vector.multi_reduction <add>, %44, %cst_22 [0] : vector<8x128xf32> to vector<128xf32>
    %46 = vector.shape_cast %45 : vector<128xf32> to vector<1x128xf32>
    %cst_23 = arith.constant 0.166666672 : f32
    %47 = vector.broadcast %cst_23 : f32 to vector<1x128xf32>
    %48 = arith.mulf %46, %47 : vector<1x128xf32>
    %49 = vector.broadcast %48 : vector<1x128xf32> to vector<8x128xf32>
    %50 = arith.subf %42, %49 : vector<8x128xf32>
    %51 = arith.mulf %50, %50 : vector<8x128xf32>
    %52 = vector.broadcast %11 : vector<8x1xf32> to vector<8x128xf32>
    %53 = arith.mulf %51, %52 : vector<8x128xf32>
    %cst_24 = arith.constant dense<0.000000e+00> : vector<128xf32>
    %54 = vector.multi_reduction <add>, %53, %cst_24 [0] : vector<8x128xf32> to vector<128xf32>
    %55 = vector.shape_cast %54 : vector<128xf32> to vector<1x128xf32>
    %cst_25 = arith.constant 0.166666672 : f32
    %56 = vector.broadcast %cst_25 : f32 to vector<1x128xf32>
    %57 = arith.mulf %55, %56 : vector<1x128xf32>
    %cst_26 = arith.constant 9.99999974E-6 : f32
    %58 = vector.broadcast %cst_26 : f32 to vector<1x128xf32>
    %59 = arith.addf %57, %58 : vector<1x128xf32>
    %60 = math.rsqrt %59 : vector<1x128xf32>
    %61 = arith.mulf %60, %5 : vector<1x128xf32>
    %62 = vector.broadcast %61 : vector<1x128xf32> to vector<8x128xf32>
    %63 = arith.mulf %50, %62 : vector<8x128xf32>
    %64 = vector.broadcast %6 : vector<1x128xf32> to vector<8x128xf32>
    %65 = arith.addf %63, %64 : vector<8x128xf32>
    %cst_27 = arith.constant 0.000000e+00 : f32
    %66 = vector.broadcast %cst_27 : f32 to vector<8x128xf32>
    %67 = arith.maximumf %65, %66 : vector<8x128xf32>
    %c0_28 = arith.constant 0 : index
    %c0_29 = arith.constant 0 : index
    %68 = vector.load %arg4[%c0_28, %c0_29] : memref<8x128xf32, #tpu.memory_space<vmem>>, vector<8x128xf32>
    tpu.vector_store %arg4[%c0_28, %c0_29], %67 {strides = array<i32>} : memref<8x128xf32, #tpu.memory_space<vmem>>, vector<8x128xf32>,
    return
  }
}

</mosaic_0001>

<bundles_post_ra>
// kernel: unimodal_forward.1
= control target key start
LH: loop header
LB: loop body
LE: loop exit
PB: predicated region body
PF: predicated region fallthrough
CT: control target
= control target key end

     0   :  { %9 = vsyncpa [#allocation3], 0  ;;  %s755_s0 = inlined_call_operand.vmem [shape: f32[8,128], index: 0, kind: input, shape index: {}]   ;;  %s756_s1 = inlined_call_operand.vmem [shape: f32[8,128], index: 1, kind: input, shape index: {}]   ;;  %s757_s2 = inlined_call_operand.hbm [shape: f32[264,256], index: 2, kind: input, shape index: {}]   ;;  %s758_s3 = inlined_call_operand.hbm [shape: f32[264,128], index: 3, kind: input, shape index: {}]   ;;  %s759_s4 = inlined_call_operand.vmem [shape: f32[8,128], index: 4, kind: output, shape index: {}]  }
   0x1   :  { %10 = vsyncpa [#allocation5], 0  ;;  %s679_s15 = smov [#allocation2]   ;;  %s631_s19 = scalar_lea.hbm %s757_s2, 8448 }
   0x2   :  { %s20_s16 = sshll.u32 %s679_s15, 4  ;;  %p632_p0 = scmp.ne.s32.totalorder %s757_s2, %s631_s19  ;;  %s21_s16 = int_to_ptr.vmem [resolvable:$true] %s20_s16 }
   0x3   :  { %p635_p1 = scmp.lt.u32.totalorder %s631_s19, %s757_s2 }
   0x5   :  { %p637_p2 = pnand %p635_p1, %p632_p0 }
   0x7   :  { %640 = shalt.err (!%p637_p2)
}
   0x8   :  { %s641_s24 = scalar_lea.vmem %s21_s16, 8448  ;;  %p646_p4 = scmp.lt.s32.totalorder %s21_s16, %s21_s16 }
   0x9   :  { %p642_p3 = scmp.ne.s32.totalorder %s21_s16, %s641_s24  ;;  %p647_p5 = scmp.lt.s32.totalorder %s641_s24, %s641_s24 }
   0xb   :  { %p648_p6 = por %p647_p5, %p646_p4 }
   0xd   :  { %p649_p7 = pnand %p648_p6, %p642_p3 }
   0xf   :  { %652 = shalt.err (!%p649_p7)
}
  0x10   :  { %s680_s25 = smov 256   ;;  %s681_s26 = smov 16  }
  0x11   :  { %26 = dma.hbm_to_vmem [thread:$0]  %s757_s2, 8448, %s21_s16, [#allocation3], %s680_s25, %s680_s25, %s681_s26  }
  0x12   :  { %s682_s29 = smov [#allocation4]   ;;  %s653_s7 = scalar_lea.hbm %s758_s3, 4224 }
  0x13   :  { %s32_s30 = sshll.u32 %s682_s29, 4  ;;  %p654_p8 = scmp.ne.s32.totalorder %s758_s3, %s653_s7  ;;  %s33_s30 = int_to_ptr.vmem [resolvable:$true] %s32_s30 }
  0x14   :  { %p657_p9 = scmp.lt.u32.totalorder %s653_s7, %s758_s3 }
  0x16   :  { %p659_p10 = pnand %p657_p9, %p654_p8 }
  0x18   :  { %662 = shalt.err (!%p659_p10)
}
  0x19   :  { %s663_s12 = scalar_lea.vmem %s33_s30, 4224  ;;  %p668_p12 = scmp.lt.s32.totalorder %s33_s30, %s33_s30 }
  0x1a   :  { %p664_p11 = scmp.ne.s32.totalorder %s33_s30, %s663_s12  ;;  %p669_p13 = scmp.lt.s32.totalorder %s663_s12, %s663_s12 }
  0x1c   :  { %p670_p0 = por %p669_p13, %p668_p12 }
  0x1e   :  { %p671_p1 = pnand %p670_p0, %p664_p11 }
  0x20   :  { %674 = shalt.err (!%p671_p1)
}
  0x21   :  { %s683_s2 = smov 128   ;;  %s684_s13 = smov 8  }
  0x22   :  { %38 = dma.hbm_to_vmem [thread:$0]  %s758_s3, 4224, %s33_s30, [#allocation5], %s683_s2, %s683_s2, %s684_s13  }
  0x23   :  { %675 = dma.done.wait [#allocation3], 8448  }
  0x24   :  { %676 = vsyncadd [#allocation3], 4294958848 }
  0x25   :  { %677 = dma.done.wait [#allocation5], 4224  }
  0x26   :  { %678 = vsyncadd [#allocation5], 4294963072  ;;  %v685_v0 = vmov 0.0   ;;  %v78_v1 = vld [vmem:[#allocation2 + $0x108] sm:$0xff]  ;;  %v80_v2 = vld [vmem:[#allocation2 + $0x118] sm:$0xff] }
  0x27   :  { %218 = vmatprep.mubr.f32.mxu0 %v685_v0  ;;  %v77_v3 = vld [vmem:[#allocation2 + $0x100] sm:$0xff]  ;;  %v520_v4 = vpack.c.bf16 %v80_v2, %v78_v1  ;;  %v79_v5 = vld [vmem:[#allocation2 + $0x110] sm:$0xff]  ;;  %v82_v6 = vld [vmem:[#allocation2 + $0x128] sm:$0xff] }
  0x28   :  { %v84_v7 = vld [vmem:[#allocation2 + $0x138] sm:$0xff]  ;;  %v522_v8 = vpack.c.bf16 %v79_v5, %v77_v3  ;;  %v81_v10 = vld [vmem:[#allocation2 + $0x120] sm:$0xff]  ;;  %v83_v11 = vld [vmem:[#allocation2 + $0x130] sm:$0xff] }
  0x29   :  { %v524_v9 = vpack.c.bf16 %v84_v7, %v82_v6  ;;  %v86_v12 = vld [vmem:[#allocation2 + $0x148] sm:$0xff]  ;;  %521 = vmatprep.subr.bf16.mxu0 %v520_v4  ;;  %v88_v13 = vld [vmem:[#allocation2 + $0x158] sm:$0xff]  ;;  %v526_v14 = vpack.c.bf16 %v83_v11, %v81_v10  ;;  %v85_v16 = vld [vmem:[#allocation2 + $0x140] sm:$0xff] }
  0x2a   :  { %523 = vmatpush1.bf16.msra.mxu0 %v522_v8  ;;  %v528_v15 = vpack.c.bf16 %v88_v13, %v86_v12  ;;  %v87_v17 = vld [vmem:[#allocation2 + $0x150] sm:$0xff]  ;;  %v90_v18 = vld [vmem:[#allocation2 + $0x168] sm:$0xff]  ;;  %v92_v19 = vld [vmem:[#allocation2 + $0x178] sm:$0xff] }
  0x2b   :  { %525 = vmatprep.subr.bf16.mxu0 %v524_v9  ;;  %v530_v20 = vpack.c.bf16 %v87_v17, %v85_v16  ;;  %v532_v21 = vpack.c.bf16 %v92_v19, %v90_v18  ;;  %v89_v22 = vld [vmem:[#allocation2 + $0x160] sm:$0xff]  ;;  %v91_v23 = vld [vmem:[#allocation2 + $0x170] sm:$0xff]  ;;  %v94_v24 = vld [vmem:[#allocation2 + $0x188] sm:$0xff] }
  0x2c   :  { %v96_v25 = vld [vmem:[#allocation2 + $0x198] sm:$0xff]  ;;  %v534_v26 = vpack.c.bf16 %v91_v23, %v89_v22  ;;  %v93_v28 = vld [vmem:[#allocation2 + $0x180] sm:$0xff]  ;;  %v95_v29 = vld [vmem:[#allocation2 + $0x190] sm:$0xff] }
  0x2d   :  { %v536_v27 = vpack.c.bf16 %v96_v25, %v94_v24  ;;  %v98_v30 = vld [vmem:[#allocation2 + $0x1a8] sm:$0xff]  ;;  %v100_v31 = vld [vmem:[#allocation2 + $0x1b8] sm:$0xff]  ;;  %v538_v32 = vpack.c.bf16 %v95_v29, %v93_v28  ;;  %v97_v34 = vld [vmem:[#allocation2 + $0x1a0] sm:$0xff] }
  0x2e   :  { %527 = vmatpush1.bf16.msra.mxu0 %v526_v14  ;;  %v540_v33 = vpack.c.bf16 %v100_v31, %v98_v30  ;;  %v99_v35 = vld [vmem:[#allocation2 + $0x1b0] sm:$0xff]  ;;  %v102_v36 = vld [vmem:[#allocation2 + $0x1c8] sm:$0xff]  ;;  %v104_v37 = vld [vmem:[#allocation2 + $0x1d8] sm:$0xff] }
  0x2f   :  { %529 = vmatprep.subr.bf16.mxu0 %v528_v15  ;;  %v542_v38 = vpack.c.bf16 %v99_v35, %v97_v34  ;;  %v544_v39 = vpack.c.bf16 %v104_v37, %v102_v36  ;;  %v101_v40 = vld [vmem:[#allocation2 + $0x1c0] sm:$0xff]  ;;  %v103_v41 = vld [vmem:[#allocation2 + $0x1d0] sm:$0xff]  ;;  %v106_v42 = vld [vmem:[#allocation2 + $0x1e8] sm:$0xff] }
  0x30   :  { %v108_v43 = vld [vmem:[#allocation2 + $0x1f8] sm:$0xff]  ;;  %v546_v44 = vpack.c.bf16 %v103_v41, %v101_v40  ;;  %v105_v46 = vld [vmem:[#allocation2 + $0x1e0] sm:$0xff]  ;;  %v107_v47 = vld [vmem:[#allocation2 + $0x1f0] sm:$0xff] }
  0x31   :  { %v548_v45 = vpack.c.bf16 %v108_v43, %v106_v42  ;;  %v46_v48 = vld [vmem:[#allocation2 + $0x8] sm:$0xff]  ;;  %v48_v49 = vld [vmem:[#allocation2 + $0x18] sm:$0xff]  ;;  %v550_v50 = vpack.c.bf16 %v107_v47, %v105_v46  ;;  %v45_v52 = vld [vmem:[#allocation2] sm:$0xff] }
  0x32   :  { %531 = vmatpush1.bf16.msra.mxu0 %v530_v20  ;;  %v552_v51 = vpack.c.bf16 %v48_v49, %v46_v48  ;;  %v47_v53 = vld [vmem:[#allocation2 + $0x10] sm:$0xff]  ;;  %v50_v54 = vld [vmem:[#allocation2 + $0x28] sm:$0xff]  ;;  %v52_v55 = vld [vmem:[#allocation2 + $0x38] sm:$0xff] }
  0x33   :  { %533 = vmatprep.subr.bf16.mxu0 %v532_v21  ;;  %v153_v56 = vld [vmem:[%s756_s1] sm:$0xff]  ;;  %v554_v57 = vpack.c.bf16 %v47_v53, %v45_v52  ;;  %v556_v58 = vpack.c.bf16 %v52_v55, %v50_v54  ;;  %v51_v60 = vld [vmem:[#allocation2 + $0x30] sm:$0xff]  ;;  %v54_v61 = vld [vmem:[#allocation2 + $0x48] sm:$0xff] }
  0x34   :  { %v49_v59 = vld [vmem:[#allocation2 + $0x20] sm:$0xff]  ;;  %v56_v62 = vld [vmem:[#allocation2 + $0x58] sm:$0xff]  ;;  %v55_v3 = vld [vmem:[#allocation2 + $0x50] sm:$0xff] }
  0x35   :  { %v558_v63 = vpack.c.bf16 %v51_v60, %v49_v59  ;;  %v560_v1 = vpack.c.bf16 %v56_v62, %v54_v61  ;;  %v53_v2 = vld [vmem:[#allocation2 + $0x40] sm:$0xff]  ;;  %v58_v4 = vld [vmem:[#allocation2 + $0x68] sm:$0xff]  ;;  %v60_v5 = vld [vmem:[#allocation2 + $0x78] sm:$0xff] }
  0x36   :  { %535 = vmatpush1.bf16.msra.mxu0 %v534_v26  ;;  %v562_v6 = vpack.c.bf16 %v55_v3, %v53_v2  ;;  %v564_v7 = vpack.c.bf16 %v60_v5, %v58_v4  ;;  %v57_v8 = vld [vmem:[#allocation2 + $0x60] sm:$0xff]  ;;  %v59_v9 = vld [vmem:[#allocation2 + $0x70] sm:$0xff]  ;;  %v62_v10 = vld [vmem:[#allocation2 + $0x88] sm:$0xff] }
  0x37   :  { %537 = vmatprep.subr.bf16.mxu0 %v536_v27  ;;  %v64_v11 = vld [vmem:[#allocation2 + $0x98] sm:$0xff]  ;;  %v566_v12 = vpack.c.bf16 %v59_v9, %v57_v8  ;;  %v61_v14 = vld [vmem:[#allocation2 + $0x80] sm:$0xff]  ;;  %v63_v15 = vld [vmem:[#allocation2 + $0x90] sm:$0xff] }
  0x38   :  { %v568_v13 = vpack.c.bf16 %v64_v11, %v62_v10  ;;  %v66_v16 = vld [vmem:[#allocation2 + $0xa8] sm:$0xff]  ;;  %v68_v17 = vld [vmem:[#allocation2 + $0xb8] sm:$0xff]  ;;  %v570_v18 = vpack.c.bf16 %v63_v15, %v61_v14  ;;  %v65_v20 = vld [vmem:[#allocation2 + $0xa0] sm:$0xff] }
  0x39   :  { %v572_v19 = vpack.c.bf16 %v68_v17, %v66_v16  ;;  %v67_v21 = vld [vmem:[#allocation2 + $0xb0] sm:$0xff]  ;;  %v70_v22 = vld [vmem:[#allocation2 + $0xc8] sm:$0xff]  ;;  %v72_v23 = vld [vmem:[#allocation2 + $0xd8] sm:$0xff] }
  0x3a   :  { %539 = vmatpush1.bf16.msra.mxu0 %v538_v32  ;;  %v574_v24 = vpack.c.bf16 %v67_v21, %v65_v20  ;;  %v576_v25 = vpack.c.bf16 %v72_v23, %v70_v22  ;;  %v69_v26 = vld [vmem:[#allocation2 + $0xc0] sm:$0xff]  ;;  %v71_v27 = vld [vmem:[#allocation2 + $0xd0] sm:$0xff]  ;;  %v74_v28 = vld [vmem:[#allocation2 + $0xe8] sm:$0xff]  ;;  %v147_v21 = vlaneseq }
  0x3b   :  { %541 = vmatprep.subr.bf16.mxu0 %v540_v33  ;;  %v76_v29 = vld [vmem:[#allocation2 + $0xf8] sm:$0xff]  ;;  %v578_v30 = vpack.c.bf16 %v71_v27, %v69_v26  ;;  %v73_v32 = vld [vmem:[#allocation2 + $0xe0] sm:$0xff]  ;;  %v75_v33 = vld [vmem:[#allocation2 + $0xf0] sm:$0xff] }
  0x3c   :  { %v580_v31 = vpack.c.bf16 %v76_v29, %v74_v28  ;;  %v582_v34 = vpack.c.bf16 %v75_v33, %v73_v32  ;;  %v152_v35 = vld [vmem:[%s755_s0] sm:$0xff]  ;;  %v129_v36 = vld [vmem:[#allocation4 + $0x80] sm:$0xff]  ;;  %v130_v37 = vld [vmem:[#allocation4 + $0x88] sm:$0xff]  ;;  %v148_v22 = vshrl.u32 %v147_v21, 7 }
  0x3d   :  { %v114_v40 = vld [vmem:[#allocation4 + $0x8] sm:$0xff]  ;;  %v131_v42 = vld [vmem:[#allocation4 + $0x90] sm:$0xff]  ;;  %v132_v43 = vld [vmem:[#allocation4 + $0x98] sm:$0xff] }
  0x3e   :  { %543 = vmatpush1.bf16.msra.mxu0 %v542_v38  ;;  %v584_v38 = vpack.c.bf16 %v130_v37, %v129_v36  ;;  %v116_v46 = vld [vmem:[#allocation4 + $0x18] sm:$0xff]  ;;  %v133_v48 = vld [vmem:[#allocation4 + $0xa0] sm:$0xff]  ;;  %v134_v49 = vld [vmem:[#allocation4 + $0xa8] sm:$0xff]  ;;  %vm149_vm0 = vcmp.lt.s32.totalorder %v148_v22, 6 }
  0x3f   :  { %545 = vmatprep.subr.bf16.mxu0 %v544_v39  ;;  %v113_v39 = vld [vmem:[#allocation4] sm:$0xff]  ;;  %v118_v52 = vld [vmem:[#allocation4 + $0x28] sm:$0xff]  ;;  %v135_v54 = vld [vmem:[#allocation4 + $0xb0] sm:$0xff]  ;;  %v744_v23 = vsel %vm149_vm0, 1.0, %v685_v0 }
  0x40   :  { %v586_v41 = vpack.c.bf16 %v114_v40, %v113_v39  ;;  %585 = vmatprep.subr.bf16.mxu1 %v584_v38  ;;  %v136_v55 = vld [vmem:[#allocation4 + $0xb8] sm:$0xff]  ;;  %v137_v60 = vld [vmem:[#allocation4 + $0xc0] sm:$0xff]  ;;  %v138_v61 = vld [vmem:[#allocation4 + $0xc8] sm:$0xff] }
  0x41   :  { %v600_v62 = vpack.c.bf16 %v138_v61, %v137_v60  ;;  %v139_v3 = vld [vmem:[#allocation4 + $0xd0] sm:$0xff]  ;;  %v140_v4 = vld [vmem:[#allocation4 + $0xd8] sm:$0xff]  ;;  %v141_v9 = vld [vmem:[#allocation4 + $0xe0] sm:$0xff] }
  0x42   :  { %547 = vmatpush1.bf16.msra.mxu0 %v546_v44  ;;  %587 = vmatpush3.bf16.msra.mxu1 %v586_v41  ;;  %v588_v44 = vpack.c.bf16 %v132_v43, %v131_v42  ;;  %v604_v5 = vpack.c.bf16 %v140_v4, %v139_v3  ;;  %v142_v10 = vld [vmem:[#allocation4 + $0xe8] sm:$0xff]  ;;  %v143_v15 = vld [vmem:[#allocation4 + $0xf0] sm:$0xff]  ;;  %v144_v16 = vld [vmem:[#allocation4 + $0xf8] sm:$0xff] }
  0x43   :  { %549 = vmatprep.subr.bf16.mxu0 %v548_v45  ;;  %v115_v45 = vld [vmem:[#allocation4 + $0x10] sm:$0xff]  ;;  %v608_v11 = vpack.c.bf16 %v142_v10, %v141_v9 }
  0x44   :  { %v590_v47 = vpack.c.bf16 %v116_v46, %v115_v45  ;;  %589 = vmatprep.subr.bf16.mxu1 %v588_v44  ;;  %v127_v17 = vld [vmem:[#allocation4 + $0x70] sm:$0xff] }
  0x46   :  { %551 = vmatpush1.bf16.msra.mxu0 %v550_v50  ;;  %591 = vmatpush3.bf16.msra.mxu1 %v590_v47  ;;  %v592_v50 = vpack.c.bf16 %v134_v49, %v133_v48 }
  0x47   :  { %553 = vmatprep.subr.bf16.mxu0 %v552_v51  ;;  %v117_v51 = vld [vmem:[#allocation4 + $0x20] sm:$0xff] }
  0x48   :  { %v594_v53 = vpack.c.bf16 %v118_v52, %v117_v51  ;;  %593 = vmatprep.subr.bf16.mxu1 %v592_v50 }
  0x49   :  { %219 = vmatmul.mubr.f32.vlgmr.msra.gmra.mrb[0].mxu0 %v153_v56  ;;  %v596_v56 = vpack.c.bf16 %v136_v55, %v135_v54 }
  0x4a   :  { %555 = vmatpush1.bf16.msra.mxu0 %v554_v57  ;;  %289 = vmatprep.mubr.f32.mxu0 %v685_v0  ;;  %v119_v57 = vld [vmem:[#allocation4 + $0x30] sm:$0xff] }
  0x4b   :  { %557 = vmatprep.subr.bf16.mxu0 %v556_v58  ;;  %595 = vmatpush3.bf16.msra.mxu1 %v594_v53  ;;  %v120_v58 = vld [vmem:[#allocation4 + $0x38] sm:$0xff] }
  0x4c   :  { %v598_v59 = vpack.c.bf16 %v120_v58, %v119_v57  ;;  %597 = vmatprep.subr.bf16.mxu1 %v596_v56 }
  0x4e   :  { %559 = vmatpush1.bf16.msra.mxu0 %v558_v63  ;;  %v121_v63 = vld [vmem:[#allocation4 + $0x40] sm:$0xff] }
  0x4f   :  { %561 = vmatprep.subr.bf16.mxu0 %v560_v1  ;;  %599 = vmatpush3.bf16.msra.mxu1 %v598_v59  ;;  %v122_v1 = vld [vmem:[#allocation4 + $0x48] sm:$0xff] }
  0x50   :  { %v602_v2 = vpack.c.bf16 %v122_v1, %v121_v63  ;;  %601 = vmatprep.subr.bf16.mxu1 %v600_v62  ;;  %v339_v63 = vsub.s32 0, %v148_v22  ;;  %v110_v1 = vld [vmem:[#allocation2 + $0x200] ss:$8 sm:$0x3] }
  0x52   :  { %563 = vmatpush1.bf16.msra.mxu0 %v562_v6  ;;  %v123_v6 = vld [vmem:[#allocation4 + $0x50] sm:$0xff]  ;;  %v340_v3 = vrot.slane %v110_v1, %v339_v63 }
  0x53   :  { %565 = vmatprep.subr.bf16.mxu0 %v564_v7  ;;  %603 = vmatpush3.bf16.msra.mxu1 %v602_v2  ;;  %v124_v7 = vld [vmem:[#allocation4 + $0x58] sm:$0xff]  ;;  %v343_v2 = vsub.s32 1, %v148_v22 }
  0x54   :  { %v606_v8 = vpack.c.bf16 %v124_v7, %v123_v6  ;;  %605 = vmatprep.subr.bf16.mxu1 %v604_v5  ;;  %v112_v6 = vld [vmem:[#allocation2 + $0x201] ss:$8 sm:$0x3] }
  0x55   :  { %v344_v4 = vrot.slane %v110_v1, %v343_v2 }
  0x56   :  { %567 = vmatpush1.bf16.msra.mxu0 %v566_v12  ;;  %v125_v12 = vld [vmem:[#allocation4 + $0x60] sm:$0xff] }
  0x57   :  { %569 = vmatprep.subr.bf16.mxu0 %v568_v13  ;;  %607 = vmatpush3.bf16.msra.mxu1 %v606_v8  ;;  %v126_v13 = vld [vmem:[#allocation4 + $0x68] sm:$0xff] }
  0x58   :  { %v610_v14 = vpack.c.bf16 %v126_v13, %v125_v12  ;;  %609 = vmatprep.subr.bf16.mxu1 %v608_v11  ;;  %v363_v11 = vrot.slane %v112_v6, %v339_v63  ;;  %v367_v13 = vrot.slane %v112_v6, %v343_v2 }
  0x5a   :  { %571 = vmatpush1.bf16.msra.mxu0 %v570_v18  ;;  %v612_v18 = vpack.c.bf16 %v144_v16, %v143_v15 }
  0x5b   :  { %573 = vmatprep.subr.bf16.mxu0 %v572_v19  ;;  %611 = vmatpush3.bf16.msra.mxu1 %v610_v14  ;;  %v128_v19 = vld [vmem:[#allocation4 + $0x78] sm:$0xff] }
  0x5c   :  { %v614_v20 = vpack.c.bf16 %v128_v19, %v127_v17  ;;  %613 = vmatprep.subr.bf16.mxu1 %v612_v18 }
  0x5e   :  { %575 = vmatpush1.bf16.msra.mxu0 %v574_v24 }
  0x5f   :  { %577 = vmatprep.subr.bf16.mxu0 %v576_v25  ;;  %615 = vmatpush3.bf16.msra.mxu1 %v614_v20 }
  0x62   :  { %579 = vmatpush1.bf16.msra.mxu0 %v578_v30 }
  0x63   :  { %581 = vmatprep.subr.bf16.mxu0 %v580_v31 }
  0x66   :  { %583 = vmatpush1.bf16.msra.mxu0 %v582_v34 }
  0x69   :  { %290 = vmatmul.mubr.f32.vlgmr.msra.gmra.mrb[0].mxu0 %v152_v35 }
 0x13c   :  { %v291_v24 = vpop.f32.mrb[0].mxu0 }
 0x13d   :  { %v296_v25 = vmul.f32 %v744_v23, %v291_v24  ;;  %v293_v26 = vpop.f32.mrb[1].mxu0 }
 0x13e   :  { %v297_v27 = vmul.f32 %v744_v23, %v293_v26 }
 0x13f   :  { %v298_v28 = vrot.slane %v296_v25, 4 }
 0x140   :  { %v304_v29 = vrot.slane %v297_v27, 4 }
 0x141   :  { %v299_v30 = vadd.f32 %v298_v28, %v296_v25 }
 0x142   :  { %v305_v31 = vadd.f32 %v304_v29, %v297_v27 }
 0x143   :  { %v300_v32 = vrot.slane %v299_v30, 2 }
 0x144   :  { %v306_v33 = vrot.slane %v305_v31, 2 }
 0x145   :  { %v301_v34 = vadd.f32 %v300_v32, %v299_v30 }
 0x146   :  { %v307_v35 = vadd.f32 %v306_v33, %v305_v31 }
 0x147   :  { %v302_v36 = vrot.slane %v301_v34, 1 }
 0x148   :  { %v308_v37 = vrot.slane %v307_v35, 1 }
 0x149   :  { %v303_v38 = vadd.f32 %v302_v36, %v301_v34 }
 0x14a   :  { %v309_v39 = vadd.f32 %v308_v37, %v307_v35 }
 0x14b   :  { %v310_v0 = vmul.f32 0.16666667, %v303_v38 }
 0x14c   :  { %v311_v40 = vmul.f32 0.16666667, %v309_v39 }
 0x14d   :  { %v312_v41 = vsub.f32 %v291_v24, %v310_v0 }
 0x14e   :  { %v313_v42 = vsub.f32 %v293_v26, %v311_v40 }
 0x14f   :  { %v314_v43 = vmul.f32 %v312_v41, %v312_v41 }
 0x150   :  { %v315_v44 = vmul.f32 %v313_v42, %v313_v42 }
 0x151   :  { %v316_v45 = vmul.f32 %v744_v23, %v314_v43 }
 0x152   :  { %v317_v46 = vmul.f32 %v744_v23, %v315_v44 }
 0x153   :  { %v318_v47 = vrot.slane %v316_v45, 4 }
 0x154   :  { %v324_v48 = vrot.slane %v317_v46, 4 }
 0x155   :  { %v319_v49 = vadd.f32 %v318_v47, %v316_v45 }
 0x156   :  { %v325_v50 = vadd.f32 %v324_v48, %v317_v46  ;;  %v484_v46 = vld [vmem:[#allocation4 + $0x101] ss:$0 sm:$0xff] }
 0x157   :  { %v320_v51 = vrot.slane %v319_v49, 2 }
 0x158   :  { %v326_v52 = vrot.slane %v325_v50, 2 }
 0x159   :  { %v321_v53 = vadd.f32 %v320_v51, %v319_v49 }
 0x15a   :  { %v327_v54 = vadd.f32 %v326_v52, %v325_v50 }
 0x15b   :  { %v322_v55 = vrot.slane %v321_v53, 1 }
 0x15c   :  { %v328_v56 = vrot.slane %v327_v54, 1 }
 0x15d   :  { %v323_v57 = vadd.f32 %v322_v55, %v321_v53 }
 0x15e   :  { %v329_v58 = vadd.f32 %v328_v56, %v327_v54 }
 0x15f   :  { %v330_v59 = vmul.f32 0.16666667, %v323_v57 }
 0x160   :  { %v331_v60 = vmul.f32 0.16666667, %v329_v58 }
 0x161   :  { %v332_v61 = vadd.f32 1e-05, %v330_v59 }
 0x162   :  { %v333_v62 = vadd.f32 1e-05, %v331_v60 }
 0x163   :  { %625 = vrsqrt.f32 %v332_v61 }
 0x164   :  { %627 = vrsqrt.f32 %v333_v62 }
 0x16d   :  { %v626_v5 = vpop.eup %625 }
 0x16e   :  { %v628_v7 = vpop.eup %627  ;;  %v347_v8 = vmul.f32 %v626_v5, %v340_v3 }
 0x16f   :  { %v348_v9 = vmul.f32 %v628_v7, %v344_v4 }
 0x170   :  { %v352_v10 = vrot.slane %v347_v8, %v339_v63 }
 0x171   :  { %v356_v12 = vrot.slane %v348_v9, %v339_v63 }
 0x172   :  { %v357_v14 = vmul.f32 %v352_v10, %v312_v41 }
 0x173   :  { %v358_v15 = vmul.f32 %v356_v12, %v313_v42  ;;  %v145_v42 = vld [vmem:[#allocation4 + $0x100] sm:$0x1] }
 0x174   :  { %v370_v16 = vadd.f32 %v363_v11, %v357_v14 }
 0x175   :  { %v371_v17 = vadd.f32 %v367_v13, %v358_v15 }
 0x176   :  { %v372_v19 = vmax.f32 %v370_v16, 0.0 }
 0x177   :  { %v373_v18 = vmax.f32 %v371_v17, 0.0 }
 0x179   :  { %438 = vmatprep.mubr.f32.mxu1 %v373_v18 }
 0x17a   :  { %439 = vmatmul.mubr.f32.vlgmr.msra.gmra.mrb[0].mxu1 %v372_v19 }
 0x24d   :  { %v517_v20 = vpop.f32.mrb[0].mxu1 }
 0x24e   :  { %v518_v21 = vpop.f32.mrb[1].mxu1 }
 0x24f   :  { %v519_v22 = vadd.f32 %v518_v21, %v517_v20 }
 0x251   :  { %v444_v24 = vmul.f32 %v519_v22, %v744_v23 }
 0x253   :  { %v445_v25 = vrot.slane %v444_v24, 4 }
 0x255   :  { %v446_v26 = vadd.f32 %v445_v25, %v444_v24 }
 0x257   :  { %v447_v27 = vrot.slane %v446_v26, 2 }
 0x259   :  { %v448_v28 = vadd.f32 %v447_v27, %v446_v26 }
 0x25b   :  { %v449_v29 = vrot.slane %v448_v28, 1 }
 0x25d   :  { %v450_v30 = vadd.f32 %v449_v29, %v448_v28 }
 0x25f   :  { %v451_v31 = vmul.f32 0.16666667, %v450_v30 }
 0x261   :  { %v452_v32 = vsub.f32 %v519_v22, %v451_v31 }
 0x263   :  { %v453_v33 = vmul.f32 %v452_v32, %v452_v32 }
 0x265   :  { %v454_v34 = vmul.f32 %v744_v23, %v453_v33 }
 0x267   :  { %v455_v35 = vrot.slane %v454_v34, 4 }
 0x269   :  { %v456_v36 = vadd.f32 %v455_v35, %v454_v34 }
 0x26b   :  { %v457_v37 = vrot.slane %v456_v36, 2 }
 0x26d   :  { %v458_v38 = vadd.f32 %v457_v37, %v456_v36 }
 0x26f   :  { %v459_v39 = vrot.slane %v458_v38, 1 }
 0x271   :  { %v460_v0 = vadd.f32 %v459_v39, %v458_v38 }
 0x273   :  { %v461_v40 = vmul.f32 0.16666667, %v460_v0 }
 0x275   :  { %v462_v41 = vadd.f32 1e-05, %v461_v40 }
 0x277   :  { %629 = vrsqrt.f32 %v462_v41 }
 0x281   :  { %v630_v43 = vpop.eup %629 }
 0x282   :  { %v464_v44 = vmul.f32 %v630_v43, %v145_v42 }
 0x284   :  { %v468_v45 = vrot.slane %v464_v44, %v339_v63 }
 0x286   :  { %v469_v47 = vmul.f32 %v468_v45, %v452_v32 }
 0x288   :  { %v474_v48 = vadd.f32 %v484_v46, %v469_v47 }
 0x28a   :  { %v475_v49 = vmax.f32 %v474_v48, 0.0 }
 0x28c   :  { %476 = vst [vmem:[%s759_s4] sm:$0xff] %v475_v49 }
 0x28d   :  { %481 = vsyncpa [#allocation3], 1 }
 0x28e   :  { %482 = vsyncpa [#allocation5], 1 }

</bundles_post_ra>
